<compile_context>
chip_gen: v5e
topology: v5e:2x2
jax: 0.10.0
libtpu: 0.0.40
codegen_flags: <defaults>
</compile_context>

<pallas_src>
import jax
import jax.numpy as jnp
from jax.experimental import pallas as pl
from jax.experimental.pallas import tpu as pltpu

_VMEM_LIMIT_BYTES = 32 * 1024 * 1024       # safe scoped limit on v5e/v6e/v7x
_TARGET_TILE_BYTES = 4 << 20               # ~4 MiB per in/out tile (≈ HBM roofline plateau)


def build_sinusoidal_pe(d_model: int = 128, max_len: int = 187) -> jnp.ndarray:
    """Replicates SinusoidalPositionalEmbeddings.__init__ buffer construction."""
    assert d_model % 2 == 0, "d_model must be even (sin/cos interleaving)"
    position = jnp.arange(0, max_len, dtype=jnp.float32)[:, None]              # (max_len, 1)
    division_term = jnp.power(
        10000.0, -jnp.arange(0, d_model, 2, dtype=jnp.float32) / d_model
    )                                                                            # (d_model/2,)
    angles = position * division_term                                            # (max_len, d_model/2)
    pe = jnp.zeros((max_len, d_model), dtype=jnp.float32)
    pe = pe.at[:, 0::2].set(jnp.sin(angles))
    pe = pe.at[:, 1::2].set(jnp.cos(angles))
    return pe


def _add_pe_kernel(emb_ref, pe_ref, out_ref):
    # emb_ref / out_ref: (TB, S*D) lane-dense tiles (one batch tile per step).
    # pe_ref:            (1, S*D) grid-invariant table; broadcast over sublanes.
    out_ref[...] = emb_ref[...] + pe_ref[...]


def _choose_batch_tile(batch: int, row_bytes: int) -> int:
    """Pick TB rows per grid step.

    Budget: in-tile + out-tile are each double-buffered, so VMEM use is
    ~4 * TB * row_bytes (+ tiny pe).  With a ~4 MiB tile target this stays
    well under the 32 MiB scoped limit on every current chip.
    """
    tb = max(1, _TARGET_TILE_BYTES // max(row_bytes, 1))
    if tb >= batch or batch <= 8:
        return batch                        # full batch in one tile (block dim == array dim)
    # Tiled case: second-to-last block dim must be a multiple of 8.
    tb = max(8, (tb // 8) * 8)
    # Never let double-buffered in+out exceed the scoped VMEM limit.
    while tb > 8 and 4 * tb * row_bytes > _VMEM_LIMIT_BYTES - (1 << 20):
        tb -= 8
    return tb                               # ragged last block is masked by Pallas


def add_positional_embeddings(embeddings: jnp.ndarray, pe: jnp.ndarray) -> jnp.ndarray:
    """embeddings: (B, S, D); pe: (max_len, D) float32 -> (B, S, D)."""
    B, S, D = embeddings.shape
    max_len, d_model = pe.shape
    if S > max_len:
        raise ValueError(f"seq_len {S} exceeds max_len {max_len} of the positional table")
    if D != d_model:
        raise ValueError(f"embedding dim {D} != positional table dim {d_model}")

    # Lane-dense layout: flatten (S, D) -> S*D so the last dim is wide
    # (a multiple of 128 whenever S*D is), avoiding masked partial stores
    # for narrow d_model.  Contiguous trailing reshapes are free outside
    # the kernel.
    N = S * D
    emb2d = embeddings.reshape(B, N)
    pe2d = pe[:S].reshape(1, N).astype(embeddings.dtype)

    itemsize = jnp.dtype(embeddings.dtype).itemsize
    TB = _choose_batch_tile(B, N * itemsize)

    total_bytes = (2 * B * N + N) * itemsize          # read emb + pe, write out
    cost = pl.CostEstimate(flops=B * N, transcendentals=0, bytes_accessed=total_bytes)

    out2d = pl.pallas_call(
        _add_pe_kernel,
        out_shape=jax.ShapeDtypeStruct((B, N), embeddings.dtype),
        grid_spec=pltpu.PrefetchScalarGridSpec(
            num_scalar_prefetch=0,
            grid=(pl.cdiv(B, TB),),
            in_specs=[
                pl.BlockSpec((TB, N), lambda b: (b, 0)),   # batched embedding tile
                pl.BlockSpec((1, N), lambda b: (0, 0)),    # grid-invariant pe table
            ],
            out_specs=pl.BlockSpec((TB, N), lambda b: (b, 0)),
        ),
        compiler_params=pltpu.CompilerParams(
            dimension_semantics=("parallel",),             # shard batch tiles across TCs
            vmem_limit_bytes=_VMEM_LIMIT_BYTES,
        ),
        cost_estimate=cost,
    )(emb2d, pe2d)

    return out2d.reshape(B, S, D)


if __name__ == "__main__":
    d_model = 32
    max_len = 187
    batch = 2
    seq_len = 8

    key = jax.random.PRNGKey(0)
    embeddings = jax.random.normal(key, (batch, seq_len, d_model), dtype=jnp.float32)

    pe = build_sinusoidal_pe(d_model=d_model, max_len=max_len)

    out = add_positional_embeddings(embeddings, pe)
    out = jax.block_until_ready(out)

    # Reference check (plain JAX, same semantics as the PyTorch forward)
    ref = embeddings + pe[:seq_len][None, :, :]
    assert out.shape == (batch, seq_len, d_model)
    assert out.dtype == jnp.float32
    assert jnp.allclose(out, ref, atol=1e-6), "mismatch vs reference"

    print("KERNEL_OK")
</pallas_src>

<mosaic_0001>
module attributes {stable_mosaic.version = 11 : i64} {
  func.func @_add_pe_kernel(%arg0: i32, %arg1: memref<2x256xf32, #tpu.memory_space<vmem>>, %arg2: memref<1x256xf32, #tpu.memory_space<vmem>>, %arg3: memref<2x256xf32, #tpu.memory_space<vmem>>) attributes {dimension_semantics = [#tpu.dimension_semantics<parallel>], iteration_bounds = array<i64: 1>, scalar_prefetch = 0 : i64, scratch_operands = 0 : i64, tpu.core_type = #tpu.core_type<tc>, window_params = [{transform_indices = @transform_0, window_bounds = array<i64: 2, 256>}, {pipeline_mode = #tpu.pipeline_mode<synchronous>, transform_indices = @transform_1, window_bounds = array<i64: 1, 256>}, {transform_indices = @transform_2, window_bounds = array<i64: 2, 256>}]} {
    %c0 = arith.constant 0 : index
    %c0_0 = arith.constant 0 : index
    %0 = vector.load %arg1[%c0, %c0_0] : memref<2x256xf32, #tpu.memory_space<vmem>>, vector<2x256xf32>
    %c0_1 = arith.constant 0 : index
    %c0_2 = arith.constant 0 : index
    %1 = vector.load %arg2[%c0_1, %c0_2] : memref<1x256xf32, #tpu.memory_space<vmem>>, vector<1x256xf32>
    %2 = vector.broadcast %1 : vector<1x256xf32> to vector<2x256xf32>
    %3 = arith.addf %0, %2 : vector<2x256xf32>
    %c0_3 = arith.constant 0 : index
    %c0_4 = arith.constant 0 : index
    %4 = vector.load %arg3[%c0_3, %c0_4] : memref<2x256xf32, #tpu.memory_space<vmem>>, vector<2x256xf32>
    tpu.vector_store %arg3[%c0_3, %c0_4], %3 {strides = array<i32>} : memref<2x256xf32, #tpu.memory_space<vmem>>, vector<2x256xf32>,
    return
  }
  func.func @transform_0(%arg0: i32) -> (i32, i32) {
    %c0_i32 = arith.constant 0 : i32
    %c0_i32_0 = arith.constant 0 : i32
    return %arg0, %c0_i32 : i32, i32
  }
  func.func @transform_1(%arg0: i32) -> (i32, i32) {
    %c0_i32 = arith.constant 0 : i32
    %c0_i32_0 = arith.constant 0 : i32
    %c0_i32_1 = arith.constant 0 : i32
    return %c0_i32, %c0_i32_0 : i32, i32
  }
  func.func @transform_2(%arg0: i32) -> (i32, i32) {
    %c0_i32 = arith.constant 0 : i32
    %c0_i32_0 = arith.constant 0 : i32
    return %arg0, %c0_i32 : i32, i32
  }
}

</mosaic_0001>

<bundles_post_ra>
// kernel: tpu_custom_call.1
= control target key start
LH: loop header
LB: loop body
LE: loop exit
PB: predicated region body
PF: predicated region fallthrough
CT: control target
= control target key end

     0   :  { %7 = vsyncpa [#allocation3], 0  ;;  %s177_s0 = inlined_call_operand.hbm [shape: f32[2,256], index: 0, kind: input, shape index: {}]   ;;  %s178_s1 = inlined_call_operand.hbm [shape: f32[1,256], index: 1, kind: input, shape index: {}]   ;;  %s179_s2 = inlined_call_operand.hbm [shape: f32[2,256], index: 2, kind: output, shape index: {}]  }
   0x1   :  { %8 = vsyncpa [#allocation6], 0 }
   0x2   :  { %9 = vsyncpa [#allocation4], 0  ;;  %s15_s11 = sshll.u32 %s177_s0, 4  ;;  %s150_s12 = smov [#allocation2]   ;;  %s16_s11 = int_to_ptr.hbm [resolvable:$true] %s15_s11 }
   0x3   :  { %s17_s13 = sshll.u32 %s150_s12, 4  ;;  %s26_s16 = sshll.u32 %s178_s1, 4  ;;  %s18_s13 = int_to_ptr.vmem [resolvable:$true] %s17_s13  ;;  %s27_s16 = int_to_ptr.hbm [resolvable:$true] %s26_s16 }
   0x4   :  { %20 = dma.hbm_to_vmem [thread:$0]  %s16_s11, 64, %s18_s13, [#allocation3]  }
   0x5   :  { %s151_s17 = smov [#allocation5]  }
   0x6   :  { %s28_s18 = sshll.u32 %s151_s17, 4  ;;  %s29_s18 = int_to_ptr.vmem [resolvable:$true] %s28_s18 }
   0x7   :  { %31 = dma.hbm_to_vmem [thread:$0]  %s27_s16, 32, %s29_s18, [#allocation6]  }
   0x8   :  { %144 = dma.done.wait [#allocation3], 64  }
   0x9   :  { %145 = vsyncadd [#allocation3], 4294967232 }
   0xa   :  { %146 = dma.done.wait [#allocation6], 32  }
   0xb   :  { %147 = vsyncadd [#allocation6], 4294967264  ;;  %v41_v0 = vld [vmem:[#allocation5] sm:$0x3]  ;;  %vm46_vm0 = vcmask 1041408   ;;  %s152_s0 = smov [#allocation7]  }
   0xc   :  { %v43_v1 = vperm.slane %v41_v0, 0  ;;  %v44_v2 = vperm.slane %v41_v0, 1  ;;  %v40_v3 = vld [vmem:[#allocation2] sm:$0xf]  ;;  %s56_s19 = sshll.u32 %s152_s0, 4  ;;  %s58_s21 = sshll.u32 %s179_s2, 4  ;;  %s57_s19 = int_to_ptr.vmem [resolvable:$true] %s56_s19  ;;  %s59_s21 = int_to_ptr.hbm [resolvable:$true] %s58_s21 }
   0xe   :  { %v45_v4 = vrot.slane %v44_v2, 6 }
  0x10   :  { %v47_v5 = vsel %vm46_vm0, %v43_v1, %v45_v4 }
  0x11   :  { %v49_v6 = vadd.f32 %v47_v5, %v40_v3 }
  0x13   :  { %50 = vst [vmem:[#allocation7] sm:$0xf] %v49_v6 }
  0x14   :  { %61 = dma.vmem_to_hbm [thread:$0]  %s57_s19, 64, %s59_s21, [#allocation4]  }
  0x15   :  { %148 = dma.done.wait [#allocation4], 64  }
  0x16   :  { %149 = vsyncadd [#allocation4], 4294967232 }
  0x17   :  { %66 = vsyncpa [#allocation3], 1 }
  0x18   :  { %67 = vsyncpa [#allocation6], 1 }
  0x19   :  { %68 = vsyncpa [#allocation4], 1 }

</bundles_post_ra>
